<compile_context>
chip_gen: v6e
topology: v6e:2x2x1
jax: 0.10.0
libtpu: 0.0.40
codegen_flags: <defaults>
</compile_context>

<pallas_src>
import jax
import jax.numpy as jnp
from jax.experimental import pallas as pl
from jax.experimental.pallas import tpu as pltpu


def _round_up(a: int, b: int) -> int:
    return (a + b - 1) // b * b


# --------------------------- kernels ---------------------------

def _hidden_kernel(x_ref, w1_ref, b1_ref, h_ref):
    # hidden tile = relu(x_rows @ W1_tile + b1_tile)
    # bf16 MXU operands, f32 accumulation, stored bf16 for the stage-2 matmul.
    h = jnp.dot(x_ref[...], w1_ref[...], preferred_element_type=jnp.float32)
    h = jnp.maximum(h + b1_ref[...], 0.0)
    h_ref[...] = h.astype(h_ref.dtype)


def _proj_kernel(h_ref, w2_ref, o_ref):
    # logits tile = hidden_rows @ W2_vocab_tile (bias-free), f32 accumulation.
    o_ref[...] = jnp.dot(h_ref[...], w2_ref[...],
                         preferred_element_type=jnp.float32).astype(o_ref.dtype)


# --------------------------- parameter prep (run ONCE) ---------------------------

def prepare_output_layer_params(w1, b1, w2, *, h_tile=512, v_tile=1024,
                                compute_dtype=jnp.bfloat16):
    """Cast weights to the MXU compute dtype and pad H/V to tile multiples ONCE.

    Returns (params, meta). `params` should be kept and reused across forward
    calls so the full-size cast/pad HBM traffic is paid a single time.
    """
    D, H = w1.shape
    H2, V = w2.shape
    assert H2 == H and b1.shape == (H,)

    TH = min(h_tile, _round_up(H, 128))      # lane-dense hidden tiles
    H_pad = _round_up(H, TH)
    TV = min(v_tile, _round_up(V, 128))      # lane-dense logits tiles
    V_pad = _round_up(V, TV)

    w1c = w1.astype(compute_dtype)
    b1c = b1.reshape(1, H).astype(jnp.float32)
    w2c = w2.astype(compute_dtype)
    if H_pad != H:
        # Padded hidden columns: b1 pad = 0 -> relu(0) = 0, and the matching W2
        # rows are zero, so they contribute nothing to the logits.
        w1c = jnp.pad(w1c, ((0, 0), (0, H_pad - H)))
        b1c = jnp.pad(b1c, ((0, 0), (0, H_pad - H)))
        w2c = jnp.pad(w2c, ((0, H_pad - H), (0, 0)))
    if V_pad != V:
        w2c = jnp.pad(w2c, ((0, 0), (0, V_pad - V)))

    params = {"w1": w1c, "b1": b1c, "w2": w2c}
    meta = {"D": D, "H": H, "V": V, "H_pad": H_pad, "V_pad": V_pad,
            "TH": TH, "TV": TV, "compute_dtype": compute_dtype}
    return params, meta


# --------------------------- forward ---------------------------

def output_layer_forward(x, params, meta, *, row_tile=256,
                         vmem_limit_bytes=48 * 1024 * 1024,
                         out_dtype=jnp.float32):
    """OutputLayer forward (eval mode).  x: (B, T, D) -> logits (B, T, V)."""
    B, T, D = x.shape
    assert D == meta["D"]
    H_pad, V_pad = meta["H_pad"], meta["V_pad"]
    TH, TV = meta["TH"], meta["TV"]
    V = meta["V"]
    compute_dtype = meta["compute_dtype"]
    w1c, b1c, w2c = params["w1"], params["b1"], params["w2"]

    # Fold batch & time into one row axis; pad rows up to >=128 (full MXU face,
    # unmasked bf16 stores) and to a multiple of the row tile.
    R = B * T
    TR = min(row_tile, max(128, _round_up(R, 16)))
    R_pad = _round_up(R, TR)

    x2 = x.reshape(R, D).astype(compute_dtype)
    if R_pad != R:
        x2 = jnp.pad(x2, ((0, R_pad - R), (0, 0)))

    n_r = R_pad // TR
    n_h = H_pad // TH
    n_v = V_pad // TV
    itemsize = jnp.dtype(compute_dtype).itemsize
    out_itemsize = jnp.dtype(out_dtype).itemsize

    # ---- stage 1: hidden = relu(x @ W1 + b1)  -> (R_pad, H_pad) bf16 ----
    # H-tiles on the OUTER axis: the (D, TH) W1 tile keeps a constant block
    # index across the inner row axis (revisited, not re-streamed from HBM).
    stage1_cost = pl.CostEstimate(
        flops=2 * R_pad * D * H_pad,
        transcendentals=0,
        bytes_accessed=(R_pad * D * itemsize * n_h
                        + D * H_pad * itemsize
                        + R_pad * H_pad * itemsize))
    hidden = pl.pallas_call(
        _hidden_kernel,
        out_shape=jax.ShapeDtypeStruct((R_pad, H_pad), compute_dtype),
        grid_spec=pltpu.PrefetchScalarGridSpec(
            num_scalar_prefetch=0,
            grid=(n_h, n_r),
            in_specs=[
                pl.BlockSpec((TR, D), lambda h, i: (i, 0)),    # x rows
                pl.BlockSpec((D, TH), lambda h, i: (0, h)),    # W1 hidden tile
                pl.BlockSpec((1, TH), lambda h, i: (0, h)),    # b1 hidden tile
            ],
            out_specs=pl.BlockSpec((TR, TH), lambda h, i: (i, h)),
        ),
        compiler_params=pltpu.CompilerParams(
            dimension_semantics=("parallel", "arbitrary"),
            vmem_limit_bytes=vmem_limit_bytes),
        cost_estimate=stage1_cost,
    )(x2, w1c, b1c)

    # ---- stage 2: logits = hidden @ W2 over a (V-tile outer, row-tile inner) grid ----
    stage2_cost = pl.CostEstimate(
        flops=2 * R_pad * H_pad * V_pad,
        transcendentals=0,
        bytes_accessed=(R_pad * H_pad * itemsize * n_v
                        + H_pad * V_pad * itemsize
                        + R_pad * V_pad * out_itemsize))
    out = pl.pallas_call(
        _proj_kernel,
        out_shape=jax.ShapeDtypeStruct((R_pad, V_pad), out_dtype),
        grid_spec=pltpu.PrefetchScalarGridSpec(
            num_scalar_prefetch=0,
            # V tiles outer: the (H_pad, TV) W2 tile is constant across the
            # inner ("arbitrary") row axis -> revisited instead of re-DMA'd.
            grid=(n_v, n_r),
            in_specs=[
                pl.BlockSpec((TR, H_pad), lambda j, i: (i, 0)),   # hidden rows
                pl.BlockSpec((H_pad, TV), lambda j, i: (0, j)),   # W2 vocab tile
            ],
            out_specs=pl.BlockSpec((TR, TV), lambda j, i: (i, j)),
        ),
        compiler_params=pltpu.CompilerParams(
            dimension_semantics=("parallel", "arbitrary"),
            vmem_limit_bytes=vmem_limit_bytes),
        cost_estimate=stage2_cost,
    )(hidden, w2c)

    return out[:R, :V].reshape(B, T, V)


# --------------------------- references ---------------------------

def output_layer_reference_bf16(x, w1, b1, w2, compute_dtype=jnp.bfloat16):
    """Pure-JAX reference mirroring the kernel's bf16-operand / f32-accum policy."""
    B, T, D = x.shape
    xb = x.reshape(B * T, D).astype(compute_dtype)
    h = jnp.dot(xb, w1.astype(compute_dtype), preferred_element_type=jnp.float32)
    h = jnp.maximum(h + b1.reshape(1, -1).astype(jnp.float32), 0.0)
    h = h.astype(compute_dtype)
    out = jnp.dot(h, w2.astype(compute_dtype), preferred_element_type=jnp.float32)
    return out.reshape(B, T, -1)


def output_layer_reference_f32(x, w1, b1, w2):
    """True f32 reference matching the PyTorch module (looser tolerance vs bf16 MXU)."""
    h = jnp.maximum(jnp.einsum("btd,dh->bth", x, w1) + b1.reshape(1, 1, -1), 0.0)
    return jnp.einsum("bth,hv->btv", h, w2)


if __name__ == "__main__":
    # Small shapes consistent with OutputLayer: x (B, T, d_model), hidden_dim, vocab.
    B, T, D, H, V = 2, 8, 32, 64, 100

    key = jax.random.PRNGKey(0)
    kx, kw1, kb1, kw2 = jax.random.split(key, 4)

    x = jax.random.normal(kx, (B, T, D), dtype=jnp.float32)
    # nn.Linear defaults: U(-1/sqrt(fan_in), 1/sqrt(fan_in)); proj has no bias.
    bound1 = 1.0 / (D ** 0.5)
    w1 = jax.random.uniform(kw1, (D, H), jnp.float32, -bound1, bound1)
    b1 = jax.random.uniform(kb1, (H,), jnp.float32, -bound1, bound1)
    bound2 = 1.0 / (H ** 0.5)
    w2 = jax.random.uniform(kw2, (H, V), jnp.float32, -bound2, bound2)

    # One-time parameter prep (hoisted out of the forward path).
    params, meta = prepare_output_layer_params(w1, b1, w2)

    out = output_layer_forward(x, params, meta)
    out = jax.block_until_ready(out)
    assert out.shape == (B, T, V)

    # Tight check against the bf16-operand / f32-accum policy the kernel uses.
    ref_bf16 = output_layer_reference_bf16(x, w1, b1, w2)
    diff_bf16 = float(jnp.max(jnp.abs(out - ref_bf16)))
    assert jnp.allclose(out, ref_bf16, atol=1e-2, rtol=1e-2), (
        f"mismatch vs bf16-policy reference: max abs diff = {diff_bf16}")

    # Looser check against the true f32 PyTorch semantics (documents bf16 error).
    ref_f32 = output_layer_reference_f32(x, w1, b1, w2)
    diff_f32 = float(jnp.max(jnp.abs(out - ref_f32)))
    assert jnp.allclose(out, ref_f32, atol=5e-2, rtol=5e-2), (
        f"mismatch vs f32 reference: max abs diff = {diff_f32}")

    # TODO(synk): nn.Dropout(0.1) is only applied when train=True; this kernel
    # implements the eval/inference forward path (dropout == identity).
    print("KERNEL_OK")
</pallas_src>

<mosaic_0001>
module attributes {stable_mosaic.version = 11 : i64} {
  func.func @_hidden_kernel(%arg0: i32, %arg1: i32, %arg2: memref<128x32xbf16, #tpu.memory_space<vmem>>, %arg3: memref<32x128xbf16, #tpu.memory_space<vmem>>, %arg4: memref<1x128xf32, #tpu.memory_space<vmem>>, %arg5: memref<128x128xbf16, #tpu.memory_space<vmem>>) attributes {dimension_semantics = [#tpu.dimension_semantics<parallel>, #tpu.dimension_semantics<arbitrary>], iteration_bounds = array<i64: 1, 1>, scalar_prefetch = 0 : i64, scratch_operands = 0 : i64, tpu.core_type = #tpu.core_type<tc>, window_params = [{transform_indices = @transform_0, window_bounds = array<i64: 128, 32>}, {transform_indices = @transform_1, window_bounds = array<i64: 32, 128>}, {transform_indices = @transform_2, window_bounds = array<i64: 1, 128>}, {transform_indices = @transform_3, window_bounds = array<i64: 128, 128>}]} {
    %c0 = arith.constant 0 : index
    %c0_0 = arith.constant 0 : index
    %0 = vector.load %arg2[%c0, %c0_0] : memref<128x32xbf16, #tpu.memory_space<vmem>>, vector<128x32xbf16>
    %c0_1 = arith.constant 0 : index
    %c0_2 = arith.constant 0 : index
    %1 = vector.load %arg3[%c0_1, %c0_2] : memref<32x128xbf16, #tpu.memory_space<vmem>>, vector<32x128xbf16>
    %cst = arith.constant dense<0.000000e+00> : vector<128x128xf32>
    %2 = tpu.matmul %0, %1, %cst {dimension_numbers = #tpu.dot_dimension_numbers<[1], [0], [0], [1], [0, 0, 1, 1], [], []>} : vector<128x32xbf16>, vector<32x128xbf16>, vector<128x128xf32> -> vector<128x128xf32>
    %c0_3 = arith.constant 0 : index
    %c0_4 = arith.constant 0 : index
    %3 = vector.load %arg4[%c0_3, %c0_4] : memref<1x128xf32, #tpu.memory_space<vmem>>, vector<1x128xf32>
    %4 = vector.broadcast %3 : vector<1x128xf32> to vector<128x128xf32>
    %5 = arith.addf %2, %4 : vector<128x128xf32>
    %cst_5 = arith.constant 0.000000e+00 : f32
    %6 = vector.broadcast %cst_5 : f32 to vector<128x128xf32>
    %7 = arith.maximumf %5, %6 : vector<128x128xf32>
    %8 = arith.truncf %7 : vector<128x128xf32> to vector<128x128xbf16>
    %c0_6 = arith.constant 0 : index
    %c0_7 = arith.constant 0 : index
    %9 = vector.load %arg5[%c0_6, %c0_7] : memref<128x128xbf16, #tpu.memory_space<vmem>>, vector<128x128xbf16>
    tpu.vector_store %arg5[%c0_6, %c0_7], %8 {strides = array<i32>} : memref<128x128xbf16, #tpu.memory_space<vmem>>, vector<128x128xbf16>,
    return
  }
  func.func @transform_0(%arg0: i32, %arg1: i32) -> (i32, i32) {
    %c0_i32 = arith.constant 0 : i32
    %c0_i32_0 = arith.constant 0 : i32
    return %arg1, %c0_i32 : i32, i32
  }
  func.func @transform_1(%arg0: i32, %arg1: i32) -> (i32, i32) {
    %c0_i32 = arith.constant 0 : i32
    %c0_i32_0 = arith.constant 0 : i32
    return %c0_i32, %arg0 : i32, i32
  }
  func.func @transform_2(%arg0: i32, %arg1: i32) -> (i32, i32) {
    %c0_i32 = arith.constant 0 : i32
    %c0_i32_0 = arith.constant 0 : i32
    return %c0_i32, %arg0 : i32, i32
  }
  func.func @transform_3(%arg0: i32, %arg1: i32) -> (i32, i32) {
    %c0_i32 = arith.constant 0 : i32
    return %arg1, %arg0 : i32, i32
  }
}

</mosaic_0001>

<bundles_post_ra>
// kernel: tpu_custom_call.1
= control target key start
LH: loop header
LB: loop body
LE: loop exit
PB: predicated region body
PF: predicated region fallthrough
CT: control target
= control target key end

     0   :  { %vm95_vm0 = vcmask 261120   ;;  %s563_s0 = inlined_call_operand.vmem [shape: bf16[128,32], index: 0, kind: input, shape index: {}]   ;;  %s564_s1 = inlined_call_operand.vmem [shape: bf16[32,128], index: 1, kind: input, shape index: {}]   ;;  %s565_s2 = inlined_call_operand.vmem [shape: f32[1,128], index: 2, kind: input, shape index: {}]   ;;  %s566_s3 = inlined_call_operand.hbm [shape: bf16[128,128], index: 3, kind: output, shape index: {}]  }
   0x1   :  { %v464_v0 = vld [vmem:[%s564_s1 + $0x8] sm:$0xff]   ;;  %v465_v1 = vld [vmem:[%s564_s1] sm:$0xff]   ;;  %v470_v6 = vld [vmem:[%s563_s0 + $0x10] sm:$0xff]  }
   0x2   :  { %437 = vmatprep.subr.bf16.mxu0 %v464_v0  ;;  %457 = vmatprep.subr.bf16.mxu1 %v464_v0  ;;  %v466_v2 = vld [vmem:[%s563_s0] sm:$0xff]   ;;  %v468_v4 = vld [vmem:[%s563_s0 + $0x8] sm:$0xff]   ;;  %v471_v7 = vld [vmem:[%s563_s0 + $0x30] sm:$0xff]  }
   0x3   :  { %438 = vmatpush3.bf16.msra.mxu0 %v464_v0  ;;  %459 = vmatpush3.bf16.msra.mxu1 %v464_v0  ;;  %v467_v3 = vld [vmem:[%s563_s0 + $0x20] sm:$0xff]   ;;  %v469_v5 = vld [vmem:[%s563_s0 + $0x28] sm:$0xff]  }
   0x4   :  { %439 = vmatprep.subr.bf16.mxu0 %v465_v1  ;;  %458 = vmatprep.subr.bf16.mxu1 %v465_v1 }
   0x5   :  { %441 = vmatprep.mubr.msk.bf16.mxu0 %vm95_vm0, %v466_v2  ;;  %449 = vmatprep.mubr.msk.bf16.mxu1 %vm95_vm0, %v467_v3 }
   0x7   :  { %440 = vmatpush3.bf16.msra.mxu0 %v465_v1  ;;  %460 = vmatpush3.bf16.msra.mxu1 %v465_v1 }
   0xa   :  { %442 = vmatmul.mubr.msk.bf16.vlgmr.msra.gmra.mxu0 %vm95_vm0, %v468_v4  ;;  %450 = vmatmul.mubr.msk.bf16.vlgmr.msra.gmra.mxu1 %vm95_vm0, %v469_v5 }
   0xb   :  { %8 = vsyncpa [#allocation3], 0  ;;  %445 = vmatprep.mubr.msk.bf16.mxu0 %vm95_vm0, %v470_v6  ;;  %453 = vmatprep.mubr.msk.bf16.mxu1 %vm95_vm0, %v471_v7  ;;  %v472_v8 = vld [vmem:[%s563_s0 + $0x18] sm:$0xff]   ;;  %v329_v10 = vld [vmem:[%s565_s2] ss:$0 sm:$0xff] }
   0xc   :  { %v473_v9 = vld [vmem:[%s563_s0 + $0x38] sm:$0xff]   ;;  %s496_s0 = smov [#allocation2]  }
   0xd   :  { %s318_s2 = sshll.u32 %s496_s0, 4  ;;  %s319_s2 = int_to_ptr.vmem [resolvable:$true] %s318_s2 }
   0xe   :  { %s474_s6 = scalar_lea.vmem %s319_s2, 1024  ;;  %p479_p1 = scmp.lt.s32.totalorder %s319_s2, %s319_s2 }
   0xf   :  { %p475_p0 = scmp.ne.s32.totalorder %s319_s2, %s474_s6  ;;  %p480_p2 = scmp.lt.s32.totalorder %s474_s6, %s474_s6 }
  0x11   :  { %p481_p3 = por %p480_p2, %p479_p1 }
  0x12   :  { %446 = vmatmul.mubr.msk.bf16.gmra.mxu0 %vm95_vm0, %v472_v8  ;;  %454 = vmatmul.mubr.msk.bf16.gmra.mxu1 %vm95_vm0, %v473_v9 }
  0x13   :  { %p482_p4 = pnand %p481_p3, %p475_p0 }
  0xca   :  { %v443_v11 = vpop.f32.mrf.mxu0  ;;  %v451_v12 = vpop.f32.mrf.mxu1 }
  0xcb   :  { %v163_v13 = vadd.f32 %v443_v11, %v329_v10  ;;  %v195_v14 = vadd.f32 %v451_v12, %v329_v10 }
  0xcc   :  { %v154_v15 = vpop.f32.mrf.mxu0  ;;  %v186_v16 = vpop.f32.mrf.mxu1 }
  0xcd   :  { %v155_v17 = vadd.f32 %v329_v10, %v154_v15  ;;  %v187_v18 = vadd.f32 %v329_v10, %v186_v16  ;;  %v219_v23 = vmax.f32 %v163_v13, 0.0  ;;  %v227_v24 = vmax.f32 %v195_v14, 0.0 }
  0xce   :  { %v444_v19 = vpop.f32.mrf.mxu0  ;;  %v452_v20 = vpop.f32.mrf.mxu1 }
  0xcf   :  { %v166_v21 = vadd.f32 %v444_v19, %v329_v10  ;;  %v198_v22 = vadd.f32 %v452_v20, %v329_v10  ;;  %v217_v31 = vmax.f32 %v155_v17, 0.0  ;;  %v225_v32 = vmax.f32 %v187_v18, 0.0 }
  0xd0   :  { %v157_v25 = vpop.f32.mrf.mxu0  ;;  %v189_v26 = vpop.f32.mrf.mxu1 }
  0xd1   :  { %v220_v27 = vmax.f32 %v166_v21, 0.0  ;;  %v228_v28 = vmax.f32 %v198_v22, 0.0  ;;  %v158_v29 = vadd.f32 %v329_v10, %v157_v25  ;;  %v190_v30 = vadd.f32 %v329_v10, %v189_v26 }
  0xd2   :  { %v447_v33 = vpop.f32.mrf.mxu0  ;;  %v455_v34 = vpop.f32.mrf.mxu1 }
  0xd3   :  { %v388_v35 = vpack.c.bf16 %v220_v27, %v219_v23  ;;  %v408_v36 = vpack.c.bf16 %v228_v28, %v227_v24  ;;  %v218_v37 = vmax.f32 %v158_v29, 0.0  ;;  %v226_v38 = vmax.f32 %v190_v30, 0.0 }
  0xd4   :  { %v179_v39 = vadd.f32 %v447_v33, %v329_v10  ;;  %v211_v40 = vadd.f32 %v455_v34, %v329_v10  ;;  %v170_v41 = vpop.f32.mrf.mxu0  ;;  %v202_v42 = vpop.f32.mrf.mxu1 }
  0xd5   :  { %420 = vst [vmem:[#allocation2 + $0x8] sm:$0xff] %v388_v35   ;;  %424 = vst [vmem:[#allocation2 + $0x28] sm:$0xff] %v408_v36   ;;  %v383_v43 = vpack.c.bf16 %v218_v37, %v217_v31  ;;  %v403_v44 = vpack.c.bf16 %v226_v38, %v225_v32  ;;  %v171_v45 = vadd.f32 %v329_v10, %v170_v41 }
  0xd6   :  { %v203_v46 = vadd.f32 %v329_v10, %v202_v42  ;;  %v448_v47 = vpop.f32.mrf.mxu0  ;;  %v456_v48 = vpop.f32.mrf.mxu1  ;;  %v223_v51 = vmax.f32 %v179_v39, 0.0  ;;  %v231_v52 = vmax.f32 %v211_v40, 0.0 }
  0xd7   :  { %384 = vst [vmem:[#allocation2] sm:$0xff] %v383_v43   ;;  %423 = vst [vmem:[#allocation2 + $0x20] sm:$0xff] %v403_v44   ;;  %v182_v49 = vadd.f32 %v448_v47, %v329_v10  ;;  %v214_v50 = vadd.f32 %v456_v48, %v329_v10  ;;  %v221_v59 = vmax.f32 %v171_v45, 0.0 }
  0xd8   :  { %v173_v53 = vpop.f32.mrf.mxu0  ;;  %v205_v54 = vpop.f32.mrf.mxu1  ;;  %v229_v60 = vmax.f32 %v203_v46, 0.0 }
  0xd9   :  { %v224_v55 = vmax.f32 %v182_v49, 0.0  ;;  %v232_v56 = vmax.f32 %v214_v50, 0.0  ;;  %v174_v57 = vadd.f32 %v329_v10, %v173_v53  ;;  %v206_v58 = vadd.f32 %v329_v10, %v205_v54 }
  0xdb   :  { %v398_v61 = vpack.c.bf16 %v224_v55, %v223_v51  ;;  %v418_v62 = vpack.c.bf16 %v232_v56, %v231_v52  ;;  %v222_v63 = vmax.f32 %v174_v57, 0.0  ;;  %v230_v0 = vmax.f32 %v206_v58, 0.0 }
  0xdd   :  { %422 = vst [vmem:[#allocation2 + $0x18] sm:$0xff] %v398_v61   ;;  %426 = vst [vmem:[#allocation2 + $0x38] sm:$0xff] %v418_v62   ;;  %v393_v1 = vpack.c.bf16 %v222_v63, %v221_v59  ;;  %v413_v2 = vpack.c.bf16 %v230_v0, %v229_v60 }
  0xdf   :  { %421 = vst [vmem:[#allocation2 + $0x10] sm:$0xff] %v393_v1   ;;  %425 = vst [vmem:[#allocation2 + $0x30] sm:$0xff] %v413_v2  }
  0xe0   :  { %485 = shalt.err (!%p482_p4)
}
  0xe1   :  { %s497_s7 = smov 64   ;;  %s498_s8 = smov 4  }
  0xe2   :  { %324 = dma.vmem_to_hbm [thread:$0]  %s319_s2, 1024, %s566_s3, [#allocation3], %s497_s7, %s497_s7, %s498_s8  }
  0xe3   :  { %494 = dma.done.wait [#allocation3], 1024  }
  0xe4   :  { %495 = vsyncadd [#allocation3], 4294966272 }
  0xe5   :  { %328 = vsyncpa [#allocation3], 1 }

</bundles_post_ra>
